<compile_context>
chip_gen: v6e
topology: v6e:2x2x1
jax: 0.10.0
libtpu: 0.0.40
codegen_flags: <defaults>
</compile_context>

<pallas_src>
import functools

import jax
import jax.numpy as jnp
from jax.experimental import pallas as pl
from jax.experimental.pallas import tpu as pltpu


def _round_up(a, m):
    return ((a + m - 1) // m) * m


def _cdiv(a, b):
    return -(-a // b)


# ---------------------------------------------------------------------------
# Kernels
# ---------------------------------------------------------------------------

def _relu_softmax(h, use_relu):
    """relu (optional) + numerically stable, exactly normalized softmax (dim=-1)."""
    if use_relu:
        h = jnp.maximum(h, 0.0)
    m = jnp.max(h, axis=-1, keepdims=True)
    e = jnp.exp(h - m)
    # Exact divide (not pl.reciprocal(approx=True)): rows must sum to 1.
    return e / jnp.sum(e, axis=-1, keepdims=True)


def _mlp_fold_kernel(use_relu, x_ref, w_ref, b_ref, o_ref):
    """One batch tile through the folded affine map: x @ W_eff + b_eff."""
    h = jnp.dot(x_ref[...], w_ref[...], preferred_element_type=jnp.float32)
    h = h + b_ref[...]
    o_ref[...] = _relu_softmax(h, use_relu).astype(o_ref.dtype)


def _mlp_chain_kernel(n_layers, use_relu, *refs):
    """One batch tile through the un-folded layer chain (weights VMEM-resident)."""
    x_ref = refs[0]
    o_ref = refs[-1]
    h = x_ref[...]
    for l in range(n_layers):
        w_ref = refs[1 + 2 * l]
        b_ref = refs[2 + 2 * l]
        h = jnp.dot(h, w_ref[...], preferred_element_type=jnp.float32) + b_ref[...]
    o_ref[...] = _relu_softmax(h, use_relu).astype(o_ref.dtype)


# ---------------------------------------------------------------------------
# Parameter handling
# ---------------------------------------------------------------------------

def init_mlp_calw_params(key, in_channels, out_channels, hidden_dim, hidden_layers):
    """Deterministic init matching the layer shapes of MLPCalW.__init__.

    Returns a list of (W, b) with W of shape (fan_in, fan_out) - already
    transposed relative to torch.nn.Linear - using PyTorch's uniform
    (-1/sqrt(fan_in), 1/sqrt(fan_in)) range.
    """
    if hidden_layers == 0:
        dims = [(in_channels, out_channels)]
    else:
        dims = [(in_channels, hidden_dim)]
        dims += [(hidden_dim, hidden_dim)] * hidden_layers
        dims += [(hidden_dim, out_channels)]

    params = []
    for fan_in, fan_out in dims:
        key, kw, kb = jax.random.split(key, 3)
        bound = 1.0 / jnp.sqrt(jnp.float32(fan_in))
        w = jax.random.uniform(kw, (fan_in, fan_out), jnp.float32, -bound, bound)
        b = jax.random.uniform(kb, (1, fan_out), jnp.float32, -bound, bound)
        params.append((w, b))
    return params


def prepare_mlp_calw_params(params, force_fold=None):
    """Precompute (once, off the per-call path) the kernel's weight layout.

    Folds Linear_0 ... Linear_L (no activations between) into (W_eff, b_eff)
    - mathematically exact - but only when the folded matrix is not larger
    than the original chain and fits comfortably as a VMEM-resident block.
    Otherwise the per-layer weights are kept and applied in-kernel.
    """
    in_c = params[0][0].shape[0]
    out_c = params[-1][0].shape[1]
    chain_elems = sum(int(w.size) for w, _ in params)
    folded_elems = in_c * out_c
    fold_budget_bytes = 16 << 20  # resident W_eff budget, safe on every chip

    should_fold = (folded_elems <= chain_elems) and (folded_elems * 4 <= fold_budget_bytes)
    if force_fold is not None:
        should_fold = force_fold

    if should_fold:
        w_eff, b_eff = params[0]
        for w_i, b_i in params[1:]:
            b_eff = b_eff @ w_i + b_i
            w_eff = w_eff @ w_i
        return ("fold", (w_eff, b_eff))

    # TODO(synk): for very large per-layer weights, tile the K dimension with
    # an 'arbitrary' grid axis + f32 VMEM accumulator instead of keeping every
    # layer weight fully VMEM-resident.
    return ("chain", tuple(params))


# ---------------------------------------------------------------------------
# Tile / VMEM budgeting
# ---------------------------------------------------------------------------

def _vmem_budget_bytes():
    try:
        cap = int(pltpu.get_tpu_info().vmem_capacity_bytes)  # 128 MiB v5e/v6e, 64 MiB v7x
    except Exception:
        cap = 64 << 20  # safe lower bound on every generation
    return cap * 3 // 4  # headroom for compiler scratch / semaphores


def _choose_batch_tile(batch, in_c, out_c, max_tile, weight_bytes):
    budget = _vmem_budget_bytes()

    def footprint(t):
        # x / out tiles are double-buffered by the pipeline; weights use a
        # constant index_map but are counted twice as headroom in case Pallas
        # still allocates two buffers for them.
        return (2 * t * in_c * 4 + 2 * t * out_c * 4 + 2 * weight_bytes + (2 << 20))

    batch8 = _round_up(max(batch, 1), 8)
    tb = max(8, min(_round_up(max_tile, 8), batch8))
    # v7x shards the "parallel" grid axis over its 2 TensorCores: aim for at
    # least 2 grid steps whenever the batch allows it.
    if batch8 >= 16 and _cdiv(batch8, tb) < 2:
        tb = _round_up(_cdiv(batch8, 2), 8)
    # Fit the VMEM budget by shrinking the tile (not by clamping the limit).
    while tb > 8 and footprint(tb) > budget:
        tb = max(8, ((tb // 2) // 8) * 8)
    return tb, footprint(tb), budget


# ---------------------------------------------------------------------------
# Forward wrapper
# ---------------------------------------------------------------------------

def mlp_calw_forward(x, prepared, use_relu=True, batch_tile=1024):
    """x: (..., in_channels) float32 -> (prod(leading), out_channels) softmax probs."""
    mode, tensors = prepared
    weights = [tensors] if mode == "fold" else list(tensors)

    in_c = weights[0][0].shape[0]
    out_c = weights[-1][0].shape[1]

    # nn.Linear acts on the last dim and .view(-1, out_channels) flattens the
    # leading dims afterwards - equivalent to flattening x first.
    x = x.reshape(-1, in_c).astype(jnp.float32)
    batch = x.shape[0]

    weight_bytes = sum(int(w.size) * 4 + int(b.size) * 4 for w, b in weights)
    tb, footprint, budget = _choose_batch_tile(batch, in_c, out_c, batch_tile, weight_bytes)

    batch_pad = _round_up(batch, tb)
    if batch_pad != batch:
        x = jnp.pad(x, ((0, batch_pad - batch), (0, 0)))
    grid = (batch_pad // tb,)

    # Specs: x / out are batch-tiled; weights & biases are full-array blocks
    # with a constant index_map so they stay VMEM-resident across the grid.
    in_specs = [pl.BlockSpec((tb, in_c), lambda i: (i, 0))]
    args = [x]
    for w, b in weights:
        in_specs.append(pl.BlockSpec(tuple(w.shape), lambda i: (0, 0)))
        in_specs.append(pl.BlockSpec(tuple(b.shape), lambda i: (0, 0)))
        args.extend([w, b])

    if mode == "fold":
        kernel = functools.partial(_mlp_fold_kernel, use_relu)
    else:
        kernel = functools.partial(_mlp_chain_kernel, len(weights), use_relu)

    flops = 2 * batch_pad * sum(int(w.shape[0]) * int(w.shape[1]) for w, _ in weights)
    bytes_accessed = int(x.size) * 4 + weight_bytes + batch_pad * out_c * 4
    cost = pl.CostEstimate(
        flops=int(flops),
        transcendentals=int(batch_pad * out_c),
        bytes_accessed=int(bytes_accessed),
    )

    out = pl.pallas_call(
        kernel,
        out_shape=jax.ShapeDtypeStruct((batch_pad, out_c), jnp.float32),
        grid=grid,
        in_specs=in_specs,
        out_specs=pl.BlockSpec((tb, out_c), lambda i: (i, 0)),
        compiler_params=pltpu.CompilerParams(
            dimension_semantics=("parallel",),
            vmem_limit_bytes=int(min(budget, max(footprint, 32 << 20))),
        ),
        cost_estimate=cost,
    )(*args)

    # Only batch padding (if any) to strip; output lanes are already exact.
    return out[:batch] if batch_pad != batch else out


def _reference_forward(x, params, use_relu=True):
    h = x.reshape(-1, params[0][0].shape[0])
    for w, b in params:
        h = h @ w + b
    if use_relu:
        h = jnp.maximum(h, 0.0)
    return jax.nn.softmax(h, axis=1)


if __name__ == "__main__":
    # Small shapes consistent with the module: 2-D input (N, in_channels).
    batch = 20            # not a multiple of the tile -> exercises batch padding
    in_channels = 4
    out_channels = 4
    hidden_dim = 32
    hidden_layers = 1     # -> Linear(4,32), Linear(32,32), Linear(32,4)

    key = jax.random.PRNGKey(0)
    key, kx = jax.random.split(key)
    x = jax.random.uniform(kx, (batch, in_channels), jnp.float32)
    params = init_mlp_calw_params(key, in_channels, out_channels, hidden_dim, hidden_layers)

    ref = _reference_forward(x, params, use_relu=True)

    # Folded (fast) path.
    prepared = prepare_mlp_calw_params(params)
    out = jax.block_until_ready(mlp_calw_forward(x, prepared, use_relu=True))
    assert out.shape == (batch, out_channels)
    assert jnp.allclose(out, ref, atol=1e-5, rtol=1e-5), "fold path mismatch vs reference"
    assert jnp.allclose(jnp.sum(out, axis=1), 1.0, atol=1e-5), "rows must sum to 1"

    # Un-folded chain path (the fold-guard fallback), exercised for coverage.
    prepared_chain = prepare_mlp_calw_params(params, force_fold=False)
    out2 = jax.block_until_ready(mlp_calw_forward(x, prepared_chain, use_relu=True))
    assert jnp.allclose(out2, ref, atol=1e-5, rtol=1e-5), "chain path mismatch vs reference"
    assert jnp.allclose(jnp.sum(out2, axis=1), 1.0, atol=1e-5), "rows must sum to 1 (chain)"

    print("KERNEL_OK")
</pallas_src>

<mosaic_0001>
module attributes {stable_mosaic.version = 11 : i64} {
  func.func @_mlp_fold_kernel(%arg0: i32, %arg1: memref<16x4xf32, #tpu.memory_space<vmem>>, %arg2: memref<4x4xf32, #tpu.memory_space<vmem>>, %arg3: memref<1x4xf32, #tpu.memory_space<vmem>>, %arg4: memref<16x4xf32, #tpu.memory_space<vmem>>) attributes {dimension_semantics = [#tpu.dimension_semantics<parallel>], iteration_bounds = array<i64: 2>, scalar_prefetch = 0 : i64, scratch_operands = 0 : i64, tpu.core_type = #tpu.core_type<tc>, window_params = [{transform_indices = @transform_0, window_bounds = array<i64: 16, 4>}, {pipeline_mode = #tpu.pipeline_mode<synchronous>, transform_indices = @transform_1, window_bounds = array<i64: 4, 4>}, {pipeline_mode = #tpu.pipeline_mode<synchronous>, transform_indices = @transform_2, window_bounds = array<i64: 1, 4>}, {transform_indices = @transform_3, window_bounds = array<i64: 16, 4>}]} {
    %c0 = arith.constant 0 : index
    %c0_0 = arith.constant 0 : index
    %0 = vector.load %arg1[%c0, %c0_0] : memref<16x4xf32, #tpu.memory_space<vmem>>, vector<16x4xf32>
    %c0_1 = arith.constant 0 : index
    %c0_2 = arith.constant 0 : index
    %1 = vector.load %arg2[%c0_1, %c0_2] : memref<4x4xf32, #tpu.memory_space<vmem>>, vector<4x4xf32>
    %cst = arith.constant dense<0.000000e+00> : vector<16x4xf32>
    %2 = tpu.matmul %0, %1, %cst {dimension_numbers = #tpu.dot_dimension_numbers<[1], [0], [0], [1], [0, 0, 1, 1], [], []>} : vector<16x4xf32>, vector<4x4xf32>, vector<16x4xf32> -> vector<16x4xf32>
    %c0_3 = arith.constant 0 : index
    %c0_4 = arith.constant 0 : index
    %3 = vector.load %arg3[%c0_3, %c0_4] : memref<1x4xf32, #tpu.memory_space<vmem>>, vector<1x4xf32>
    %4 = vector.broadcast %3 : vector<1x4xf32> to vector<16x4xf32>
    %5 = arith.addf %2, %4 : vector<16x4xf32>
    %cst_5 = arith.constant 0.000000e+00 : f32
    %6 = vector.broadcast %cst_5 : f32 to vector<16x4xf32>
    %7 = arith.maximumf %5, %6 : vector<16x4xf32>
    %cst_6 = arith.constant dense<0xFF800000> : vector<16xf32>
    %8 = vector.multi_reduction <maximumf>, %7, %cst_6 [1] : vector<16x4xf32> to vector<16xf32>
    %9 = vector.shape_cast %8 : vector<16xf32> to vector<16x1xf32>
    %10 = vector.broadcast %9 : vector<16x1xf32> to vector<16x4xf32>
    %11 = arith.subf %7, %10 : vector<16x4xf32>
    %12 = math.exp %11 : vector<16x4xf32>
    %cst_7 = arith.constant dense<0.000000e+00> : vector<16xf32>
    %13 = vector.multi_reduction <add>, %12, %cst_7 [1] : vector<16x4xf32> to vector<16xf32>
    %14 = vector.shape_cast %13 : vector<16xf32> to vector<16x1xf32>
    %15 = vector.broadcast %14 : vector<16x1xf32> to vector<16x4xf32>
    %16 = arith.divf %12, %15 : vector<16x4xf32>
    %c0_8 = arith.constant 0 : index
    %c0_9 = arith.constant 0 : index
    %17 = vector.load %arg4[%c0_8, %c0_9] : memref<16x4xf32, #tpu.memory_space<vmem>>, vector<16x4xf32>
    tpu.vector_store %arg4[%c0_8, %c0_9], %16 {strides = array<i32>} : memref<16x4xf32, #tpu.memory_space<vmem>>, vector<16x4xf32>,
    return
  }
  func.func @transform_0(%arg0: i32) -> (i32, i32) {
    %c0_i32 = arith.constant 0 : i32
    %c0_i32_0 = arith.constant 0 : i32
    return %arg0, %c0_i32 : i32, i32
  }
  func.func @transform_1(%arg0: i32) -> (i32, i32) {
    %c0_i32 = arith.constant 0 : i32
    %c0_i32_0 = arith.constant 0 : i32
    %c0_i32_1 = arith.constant 0 : i32
    return %c0_i32, %c0_i32_0 : i32, i32
  }
  func.func @transform_2(%arg0: i32) -> (i32, i32) {
    %c0_i32 = arith.constant 0 : i32
    %c0_i32_0 = arith.constant 0 : i32
    %c0_i32_1 = arith.constant 0 : i32
    return %c0_i32, %c0_i32_0 : i32, i32
  }
  func.func @transform_3(%arg0: i32) -> (i32, i32) {
    %c0_i32 = arith.constant 0 : i32
    %c0_i32_0 = arith.constant 0 : i32
    return %arg0, %c0_i32 : i32, i32
  }
}

</mosaic_0001>

<bundles_post_ra>
// kernel: tpu_custom_call.1
= control target key start
LH: loop header
LB: loop body
LE: loop exit
PB: predicated region body
PF: predicated region fallthrough
CT: control target
= control target key end

     0   :  { %s419_s12 = smov 0   ;;  %s457_s0 = inlined_call_operand.vmem [shape: f32[32,4], index: 0, kind: input, shape index: {}]   ;;  %s458_s1 = inlined_call_operand.vmem [shape: f32[4,4], index: 1, kind: input, shape index: {}]   ;;  %s459_s2 = inlined_call_operand.vmem [shape: f32[1,4], index: 2, kind: input, shape index: {}]   ;;  %s460_s3 = inlined_call_operand.vmem [shape: f32[32,4], index: 3, kind: output, shape index: {}]  }
   0x1 LB: > { %s352_s13 = sadd.s32 4294967295, %s397_s12   ;;  %p356_p0 = scmp.ge.s32.totalorder %s397_s12, 1  ;;  %s397_s12 = sphi %s419_s12, %s13_s12  }
   0x2   : > { %p138_p1 = scmp.lt.s32.totalorder %s397_s12, 3 }
   0x4   : > { %p139_p2 = pnand %p356_p0, %p138_p1 }
   0x5   : > { %s357_s16 = sshll.u32 (!%p139_p2), %s352_s13, 1 }
   0x6   : > { %142 = sbr.rel (%p139_p2) target bundleno = 532 (0x214), region = 32  ;;  %p163_p3 = scmp.lt.s32.totalorder (!%p139_p2), %s357_s16, 3 }
   0xb   : > { %v176_v0 = vld [vmem:[%s458_s1] sm:$0xf]  ;;  %vm191_vm0 = vcmask 1043456   ;;  %s462_s16 = smov (!%p163_p3, %s357_s16), 3  ;;  %vm184_vm1 = vcmask 31744  }
   0xc   : > { %370 = vmatprep.subr.msk.mxu0 %vm191_vm0, %v176_v0  ;;  %s358_s17 = sshll.u32 %s462_s16, 3  ;;  %v361_v4 = vld [vmem:[%s459_s2] ss:$0 sm:$0xff] }
   0xd   : > { %371 = vmatpush3.msk.msra.mxu0 %vm191_vm0, %v176_v0  ;;  %s166_s20 = scalar_lea.vmem %s457_s0, %s358_s17  ;;  %s172_s25 = scalar_lea.vmem %s460_s3, %s358_s17 }
   0xe   : > { %v174_v1 = vld [vmem:[%s166_s20] sm:$0xff]  ;;  %v175_v2 = vld [vmem:[%s166_s20 + $0x8] sm:$0xff] }
   0xf   : > { %372 = vmatprep.mubr.msk.f32.mxu0 %vm184_vm1, %v174_v1 }
  0x10   : > { %373 = vmatmul.mubr.msk.f32.vlgmr.msra.gmra.mxu0 %vm184_vm1, %v175_v2 }
  0xd0   : > { %v374_v3 = vpop.f32.mrf.mxu0 }
  0xd1   : > { %v267_v6 = vadd.f32 %v374_v3, %v361_v4 }
  0xd2   : > { %v261_v5 = vpop.f32.mrf.mxu0 }
  0xd3   : > { %v262_v7 = vadd.f32 %v361_v4, %v261_v5  ;;  %v271_v9 = vmax.f32 %v267_v6, 0.0 }
  0xd5   : > { %v270_v8 = vmax.f32 %v262_v7, 0.0  ;;  %v275_v11 = vsel %vm184_vm1, %v271_v9, -inf }
  0xd7   : > { %v272_v10 = vsel %vm184_vm1, %v270_v8, -inf }
  0xd8   : > { %273 = vmax.xlane.f32.xlu0 %v272_v10 }
  0xdc   : > { %276 = vmax.xlane.f32.xlu0 %v275_v11 }
 0x161   : > { %v274_v12 = vpop.xlane.xlu0 %273 }
 0x162   : > { %v278_v13 = vsub.f32 %v270_v8, %v274_v12 }
 0x164   : > { %v280_v14 = vmul.f32 1.442695, %v278_v13 }
 0x165   : > { %v277_v15 = vpop.xlane.xlu0 %276 }
 0x166   : > { %383 = vpow2.f32 %v280_v14  ;;  %v279_v16 = vsub.f32 %v271_v9, %v277_v15 }
 0x168   : > { %v282_v17 = vmul.f32 1.442695, %v279_v16 }
 0x16a   : > { %385 = vpow2.f32 %v282_v17 }
 0x173   : > { %v384_v18 = vpop.eup %383 }
 0x174   : > { %v284_v19 = vsel %vm184_vm1, %v384_v18, 0.0 }
 0x175   : > { %285 = vadd.xlane.f32.xlu1 %v284_v19 }
 0x177   : > { %v386_v20 = vpop.eup %385 }
 0x178   : > { %v287_v21 = vsel %vm184_vm1, %v386_v20, 0.0 }
 0x179   : > { %288 = vadd.xlane.f32.xlu1 %v287_v21 }
 0x1fe   : > { %v286_v22 = vpop.xlane.xlu1 %285 }
 0x1ff   : > { %387 = vrcp.f32 %v286_v22 }
 0x202   : > { %v289_v23 = vpop.xlane.xlu1 %288 }
 0x203   : > { %389 = vrcp.f32 %v289_v23 }
 0x20c   : > { %v388_v24 = vpop.eup %387 }
 0x20d   : > { %v291_v25 = vmul.f32 %v388_v24, %v384_v18 }
 0x20f   : > { %294 = vst.msk [vmem:[%s172_s25] sm:$0xff] %vm184_vm1, %v291_v25 }
 0x210   : > { %v390_v26 = vpop.eup %389 }
 0x211   : > { %v293_v27 = vmul.f32 %v390_v26, %v386_v20 }
 0x213   : > { %295 = vst.msk [vmem:[%s172_s25 + $0x8] sm:$0xff] %vm184_vm1, %v293_v27 }
 0x214 PF: > { %s13_s12 = sadd.s32 1, %s397_s12  }
 0x215   : > { %p10_p4 = scmp.ge.s32.totalorder %s13_s12, 4  }
 0x217   :  { %12 = sbr.rel (!%p10_p4) target bundleno = 1 (0x1), region = 62 }

</bundles_post_ra>
